<compile_context>
chip_gen: v7x
topology: tpu7x:2x2x1
jax: 0.10.0
libtpu: 0.0.40
codegen_flags: <defaults>
</compile_context>

<pallas_src>
import functools

import jax
import jax.numpy as jnp
from jax import lax
from jax.experimental import pallas as pl
from jax.experimental.pallas import tpu as pltpu

_EPS = 1e-5
_VMEM_LIMIT = 48 * 1024 * 1024   # safe on v5e/v6e (128 MiB) and v7x (64 MiB)


def _round_up(x, m):
    return -(-x // m) * m


# ----------------------- kernel A: matmul + bias (+relu) ------------------- #
def _matmul_bias_kernel(x_ref, w_ref, b_ref, o_ref, *, apply_relu):
    # x_ref: (tm, K) bf16, w_ref: (K, Cout) bf16 (BN scale pre-folded),
    # b_ref: (1, Cout) f32.
    acc = jnp.dot(x_ref[...], w_ref[...], preferred_element_type=jnp.float32)
    acc = acc + b_ref[...]
    if apply_relu:
        acc = jnp.maximum(acc, 0.0)
    o_ref[...] = acc.astype(o_ref.dtype)


def _choose_tm(M, max_tm=512):
    # Big tiles amortize per-step overhead; keep >=2 grid steps for megacore.
    tm = min(max_tm, _round_up(pl.cdiv(M, 2), 16))
    return max(tm, 16)


def fused_matmul_bias(x2d, w2d, bias, *, apply_relu, out_dtype=jnp.float32,
                      max_tm=512):
    """out = relu?( x2d @ w2d + bias ); bf16 operands, f32 accumulation."""
    M, K = x2d.shape
    Kw, Cout = w2d.shape
    assert K == Kw
    tm = _choose_tm(M, max_tm)
    Mp = _round_up(M, tm)
    if Mp != M:
        x2d = jnp.pad(x2d, ((0, Mp - M), (0, 0)))
    bias2 = bias.reshape(1, Cout).astype(jnp.float32)

    kernel = functools.partial(_matmul_bias_kernel, apply_relu=apply_relu)
    out = pl.pallas_call(
        kernel,
        out_shape=jax.ShapeDtypeStruct((Mp, Cout), out_dtype),
        grid=(Mp // tm,),
        in_specs=[
            pl.BlockSpec((tm, K), lambda i: (i, 0)),     # activation tile
            pl.BlockSpec((K, Cout), lambda i: (0, 0)),   # weights (resident)
            pl.BlockSpec((1, Cout), lambda i: (0, 0)),   # folded BN bias
        ],
        out_specs=pl.BlockSpec((tm, Cout), lambda i: (i, 0)),
        compiler_params=pltpu.CompilerParams(
            dimension_semantics=("parallel",),
            vmem_limit_bytes=_VMEM_LIMIT),
    )(x2d.astype(jnp.bfloat16), w2d.astype(jnp.bfloat16), bias2)
    return out[:M]


# ---- kernel B: conv2(3x3,s=1) + bn2 + shortcut(+1x1 conv bn) + relu ------- #
def _conv2_res_kernel(*refs, Ho, Wo, C1, has_proj):
    if has_proj:
        y1p_ref, w2_ref, b2_ref, xs_ref, ws_ref, bs_ref, o_ref = refs
    else:
        y1p_ref, w2_ref, b2_ref, res_ref, o_ref = refs
    HW = Ho * Wo
    Cp = o_ref.shape[-1]

    acc = jnp.zeros((HW, Cp), jnp.float32)
    # 3x3 conv as 9 shifted-window matmuls over the padded VMEM tile
    # (no im2col tensor is ever materialized in HBM).
    for k in range(9):
        kh, kw = divmod(k, 3)
        tap = y1p_ref[0, kh:kh + Ho, kw:kw + Wo, :].reshape(HW, C1)
        acc = acc + jnp.dot(tap, w2_ref[k * C1:(k + 1) * C1, :],
                            preferred_element_type=jnp.float32)
    acc = acc + b2_ref[...]

    if has_proj:
        # fused 1x1 strided-conv + bn shortcut (second dot on the same tile)
        acc = acc + jnp.dot(xs_ref[0], ws_ref[...],
                            preferred_element_type=jnp.float32)
        acc = acc + bs_ref[...]
    else:
        acc = acc + res_ref[0]          # identity shortcut (f32)

    o_ref[0] = jnp.maximum(acc, 0.0).astype(o_ref.dtype)


def _conv2_block_call(y1p, w2p, b2p, extra, *, Ho, Wo, C1, has_proj):
    N, Hp, Wp, _ = y1p.shape
    KC, Cp = w2p.shape
    HW = Ho * Wo
    kernel = functools.partial(_conv2_res_kernel, Ho=Ho, Wo=Wo, C1=C1,
                               has_proj=has_proj)
    in_specs = [
        pl.BlockSpec((1, Hp, Wp, C1), lambda n: (n, 0, 0, 0)),  # padded y1
        pl.BlockSpec((KC, Cp), lambda n: (0, 0)),               # conv2 weight
        pl.BlockSpec((1, Cp), lambda n: (0, 0)),                # bn2 bias
    ]
    inputs = [y1p, w2p, b2p]
    if has_proj:
        xs2, wsp, bsp = extra
        Cin = xs2.shape[-1]
        in_specs += [
            pl.BlockSpec((1, HW, Cin), lambda n: (n, 0, 0)),    # strided x
            pl.BlockSpec((Cin, Cp), lambda n: (0, 0)),          # 1x1 weight
            pl.BlockSpec((1, Cp), lambda n: (0, 0)),            # bns bias
        ]
        inputs += [xs2, wsp, bsp]
    else:
        in_specs += [pl.BlockSpec((1, HW, Cp), lambda n: (n, 0, 0))]
        inputs += [extra.astype(jnp.float32)]

    return pl.pallas_call(
        kernel,
        out_shape=jax.ShapeDtypeStruct((N, HW, Cp), jnp.float32),
        grid=(N,),
        in_specs=in_specs,
        out_specs=pl.BlockSpec((1, HW, Cp), lambda n: (n, 0, 0)),
        compiler_params=pltpu.CompilerParams(
            dimension_semantics=("parallel",),
            vmem_limit_bytes=_VMEM_LIMIT),
    )(*inputs)


# ------------------------------- glue (JAX) -------------------------------- #
def _extract_patches_3x3(x_nhwc, stride):
    """im2col for a 3x3 conv with padding=1. Returns (N, Ho, Wo, 9*C), Ho, Wo."""
    N, H, W, C = x_nhwc.shape
    xp = jnp.pad(x_nhwc, ((0, 0), (1, 1), (1, 1), (0, 0)))
    Ho = (H + 2 - 3) // stride + 1
    Wo = (W + 2 - 3) // stride + 1
    chunks = []
    for kh in range(3):
        for kw in range(3):
            sl = xp[:,
                    kh:kh + (Ho - 1) * stride + 1:stride,
                    kw:kw + (Wo - 1) * stride + 1:stride, :]
            chunks.append(sl)
    return jnp.concatenate(chunks, axis=-1), Ho, Wo


def _bn_fold(bn):
    gamma, beta, mean, var = bn
    s = gamma / jnp.sqrt(var + _EPS)
    return s, beta - mean * s


def _flatten_conv_weight(w):
    # (Cout, Cin, kh, kw) -> (kh*kw*Cin, Cout), matching tap ordering.
    cout = w.shape[0]
    return jnp.transpose(w, (2, 3, 1, 0)).reshape(-1, cout)


def basic_block_forward(x_nchw, params, stride):
    """Pallas implementation of BasicBlock.forward. Input/output are NCHW f32."""
    x = jnp.transpose(x_nchw, (0, 2, 3, 1)).astype(jnp.float32)   # -> NHWC
    N, H, W, Cin = x.shape
    C1 = params["w1"].shape[0]
    C2 = params["w2"].shape[0]

    s1, b1 = _bn_fold(params["bn1"])
    s2, b2 = _bn_fold(params["bn2"])

    # ---- conv1 (3x3, stride) + bn1 + relu ----
    # TODO(synk): conv1's strided 3x3 window is still built via im2col in the
    # XLA wrapper (bf16); only conv2's im2col was moved fully into the kernel.
    p1, Ho, Wo = _extract_patches_3x3(x.astype(jnp.bfloat16), stride)
    M = N * Ho * Wo
    w1s = _flatten_conv_weight(params["w1"]) * s1[None, :]
    y1 = fused_matmul_bias(p1.reshape(M, 9 * Cin), w1s, b1,
                           apply_relu=True, out_dtype=jnp.bfloat16)
    y1 = y1.reshape(N, Ho, Wo, C1)

    # conv2 / shortcut weights with BN scale folded in
    w2s = _flatten_conv_weight(params["w2"]) * s2[None, :]
    has_proj = "ws" in params
    if has_proj:
        ss, bs = _bn_fold(params["bns"])
        wss = _flatten_conv_weight(params["ws"]) * ss[None, :]
        xs = x[:, ::stride, ::stride, :][:, :Ho, :Wo, :]          # (N,Ho,Wo,Cin)

    if Wo % 8 == 0:
        # ---- fused conv2 + bn2 + shortcut + relu in one kernel ----
        Cp = _round_up(C2, 128) if C2 < 128 else C2               # lane-dense out
        HW = Ho * Wo
        w2p = jnp.pad(w2s, ((0, 0), (0, Cp - C2))).astype(jnp.bfloat16)
        b2p = jnp.pad(b2, (0, Cp - C2)).reshape(1, Cp).astype(jnp.float32)
        y1p = jnp.pad(y1, ((0, 0), (1, 1), (1, 1), (0, 0)))       # spatial halo
        if has_proj:
            wsp = jnp.pad(wss, ((0, 0), (0, Cp - C2))).astype(jnp.bfloat16)
            bsp = jnp.pad(bs, (0, Cp - C2)).reshape(1, Cp).astype(jnp.float32)
            extra = (xs.reshape(N, HW, Cin).astype(jnp.bfloat16), wsp, bsp)
        else:
            extra = jnp.pad(x, ((0, 0), (0, 0), (0, 0),
                                (0, Cp - C2))).reshape(N, HW, Cp)
        out = _conv2_block_call(y1p, w2p, b2p, extra, Ho=Ho, Wo=Wo, C1=C1,
                                has_proj=has_proj)
        out = out[:, :, :C2].reshape(N, Ho, Wo, C2)
    else:
        # Fallback for layouts the fused kernel does not cover (Wo % 8 != 0):
        # bf16 im2col for conv2, residual add + relu in XLA.
        p2, _, _ = _extract_patches_3x3(y1, 1)
        y2 = fused_matmul_bias(p2.reshape(M, 9 * C1), w2s, b2,
                               apply_relu=False, out_dtype=jnp.float32)
        if has_proj:
            sc = fused_matmul_bias(xs.reshape(M, Cin), wss, bs,
                                   apply_relu=False, out_dtype=jnp.float32)
        else:
            sc = x.reshape(M, C2)
        out = jnp.maximum(y2 + sc, 0.0).reshape(N, Ho, Wo, C2)

    return jnp.transpose(out, (0, 3, 1, 2)).astype(jnp.float32)   # -> NCHW


# ------------------------- pure-JAX reference ------------------------------ #
def _ref_forward(x, params, stride):
    def conv(x, w, s, pad):
        return lax.conv_general_dilated(
            x, w, (s, s), ((pad, pad), (pad, pad)),
            dimension_numbers=("NCHW", "OIHW", "NCHW"))

    def bn(y, p):
        g, b, m, v = p
        g, b, m, v = (t[None, :, None, None] for t in (g, b, m, v))
        return (y - m) / jnp.sqrt(v + _EPS) * g + b

    y = jax.nn.relu(bn(conv(x, params["w1"], stride, 1), params["bn1"]))
    y = bn(conv(y, params["w2"], 1, 1), params["bn2"])
    sc = bn(conv(x, params["ws"], stride, 0), params["bns"]) if "ws" in params else x
    return jax.nn.relu(y + sc)


# --------------------------------- main ------------------------------------ #
def _make_params(key, in_channels, channels, stride):
    k1, k2, k3 = jax.random.split(key, 3)

    def bn_params(c, off):
        gamma = 1.0 + 0.05 * jnp.arange(c, dtype=jnp.float32)
        beta = 0.02 * jnp.arange(c, dtype=jnp.float32) - 0.1 * off
        mean = 0.01 * jnp.arange(c, dtype=jnp.float32)
        var = 1.0 + 0.1 * jnp.arange(c, dtype=jnp.float32)
        return (gamma, beta, mean, var)

    params = {
        "w1": 0.1 * jax.random.normal(k1, (channels, in_channels, 3, 3), jnp.float32),
        "bn1": bn_params(channels, 1),
        "w2": 0.1 * jax.random.normal(k2, (channels, channels, 3, 3), jnp.float32),
        "bn2": bn_params(channels, 2),
    }
    if stride != 1 or in_channels != channels:
        params["ws"] = 0.1 * jax.random.normal(k3, (channels, in_channels, 1, 1),
                                               jnp.float32)
        params["bns"] = bn_params(channels, 3)
    return params


if __name__ == "__main__":
    key = jax.random.PRNGKey(0)
    kx, kp = jax.random.split(key)
    fwd = jax.jit(basic_block_forward, static_argnums=2)

    # config 1: stride-2 block -> exercises the fused 1x1-projection shortcut
    N, in_channels, H, W = 2, 4, 16, 16
    channels, stride = 8, 2
    x = jax.random.normal(kx, (N, in_channels, H, W), jnp.float32)
    params = _make_params(kp, in_channels, channels, stride)

    out = jax.block_until_ready(fwd(x, params, stride))
    ref = jax.block_until_ready(_ref_forward(x, params, stride))
    assert out.shape == ref.shape, (out.shape, ref.shape)
    # bf16 MXU operands with f32 accumulation -> relaxed tolerance vs f32 ref
    assert jnp.allclose(out, ref, rtol=5e-2, atol=5e-2), float(
        jnp.max(jnp.abs(out - ref)))

    # config 2: stride-1 block -> exercises the identity-shortcut kernel variant
    x2 = jax.random.normal(kx, (N, channels, H, W), jnp.float32)
    params2 = _make_params(kp, channels, channels, 1)
    out2 = jax.block_until_ready(fwd(x2, params2, 1))
    ref2 = jax.block_until_ready(_ref_forward(x2, params2, 1))
    assert jnp.allclose(out2, ref2, rtol=5e-2, atol=5e-2), float(
        jnp.max(jnp.abs(out2 - ref2)))

    print("KERNEL_OK")
</pallas_src>

<mosaic_0001>
module attributes {stable_mosaic.version = 11 : i64} {
  func.func @_conv2_res_kernel(%arg0: i32, %arg1: memref<1x10x10x8xbf16, #tpu.memory_space<vmem>>, %arg2: memref<72x128xbf16, #tpu.memory_space<vmem>>, %arg3: memref<1x128xf32, #tpu.memory_space<vmem>>, %arg4: memref<1x64x4xbf16, #tpu.memory_space<vmem>>, %arg5: memref<4x128xbf16, #tpu.memory_space<vmem>>, %arg6: memref<1x128xf32, #tpu.memory_space<vmem>>, %arg7: memref<1x64x128xf32, #tpu.memory_space<vmem>>) attributes {dimension_semantics = [#tpu.dimension_semantics<parallel>], iteration_bounds = array<i64: 2>, scalar_prefetch = 0 : i64, scratch_operands = 0 : i64, tpu.core_type = #tpu.core_type<tc>, window_params = [{transform_indices = @transform_0, window_bounds = array<i64: 1, 10, 10, 8>}, {pipeline_mode = #tpu.pipeline_mode<synchronous>, transform_indices = @transform_1, window_bounds = array<i64: 72, 128>}, {pipeline_mode = #tpu.pipeline_mode<synchronous>, transform_indices = @transform_2, window_bounds = array<i64: 1, 128>}, {transform_indices = @transform_3, window_bounds = array<i64: 1, 64, 4>}, {pipeline_mode = #tpu.pipeline_mode<synchronous>, transform_indices = @transform_4, window_bounds = array<i64: 4, 128>}, {pipeline_mode = #tpu.pipeline_mode<synchronous>, transform_indices = @transform_5, window_bounds = array<i64: 1, 128>}, {transform_indices = @transform_6, window_bounds = array<i64: 1, 64, 128>}]} {
    %cst = arith.constant 0.000000e+00 : f32
    %0 = vector.broadcast %cst : f32 to vector<64x128xf32>
    %c0 = arith.constant 0 : index
    %c0_0 = arith.constant 0 : index
    %c0_1 = arith.constant 0 : index
    %c0_2 = arith.constant 0 : index
    %1 = vector.load %arg1[%c0, %c0_0, %c0_1, %c0_2] : memref<1x10x10x8xbf16, #tpu.memory_space<vmem>>, vector<1x8x8x8xbf16>
    %2 = vector.shape_cast %1 : vector<1x8x8x8xbf16> to vector<8x8x8xbf16>
    %3 = vector.shape_cast %2 : vector<8x8x8xbf16> to vector<64x8xbf16>
    %c0_3 = arith.constant 0 : index
    %c0_4 = arith.constant 0 : index
    %4 = vector.load %arg2[%c0_3, %c0_4] : memref<72x128xbf16, #tpu.memory_space<vmem>>, vector<8x128xbf16>
    %cst_5 = arith.constant dense<0.000000e+00> : vector<64x128xf32>
    %5 = tpu.matmul %3, %4, %cst_5 {dimension_numbers = #tpu.dot_dimension_numbers<[1], [0], [0], [1], [0, 0, 1, 1], [], []>} : vector<64x8xbf16>, vector<8x128xbf16>, vector<64x128xf32> -> vector<64x128xf32>
    %6 = arith.addf %0, %5 : vector<64x128xf32>
    %c0_6 = arith.constant 0 : index
    %c0_7 = arith.constant 0 : index
    %c1 = arith.constant 1 : index
    %c0_8 = arith.constant 0 : index
    %7 = vector.load %arg1[%c0_6, %c0_7, %c1, %c0_8] : memref<1x10x10x8xbf16, #tpu.memory_space<vmem>>, vector<1x8x8x8xbf16>
    %8 = vector.shape_cast %7 : vector<1x8x8x8xbf16> to vector<8x8x8xbf16>
    %9 = vector.shape_cast %8 : vector<8x8x8xbf16> to vector<64x8xbf16>
    %c8 = arith.constant 8 : index
    %c0_9 = arith.constant 0 : index
    %10 = vector.load %arg2[%c8, %c0_9] : memref<72x128xbf16, #tpu.memory_space<vmem>>, vector<8x128xbf16>
    %cst_10 = arith.constant dense<0.000000e+00> : vector<64x128xf32>
    %11 = tpu.matmul %9, %10, %cst_10 {dimension_numbers = #tpu.dot_dimension_numbers<[1], [0], [0], [1], [0, 0, 1, 1], [], []>} : vector<64x8xbf16>, vector<8x128xbf16>, vector<64x128xf32> -> vector<64x128xf32>
    %12 = arith.addf %6, %11 : vector<64x128xf32>
    %c0_11 = arith.constant 0 : index
    %c0_12 = arith.constant 0 : index
    %c2 = arith.constant 2 : index
    %c0_13 = arith.constant 0 : index
    %13 = vector.load %arg1[%c0_11, %c0_12, %c2, %c0_13] : memref<1x10x10x8xbf16, #tpu.memory_space<vmem>>, vector<1x8x8x8xbf16>
    %14 = vector.shape_cast %13 : vector<1x8x8x8xbf16> to vector<8x8x8xbf16>
    %15 = vector.shape_cast %14 : vector<8x8x8xbf16> to vector<64x8xbf16>
    %c16 = arith.constant 16 : index
    %c0_14 = arith.constant 0 : index
    %16 = vector.load %arg2[%c16, %c0_14] : memref<72x128xbf16, #tpu.memory_space<vmem>>, vector<8x128xbf16>
    %cst_15 = arith.constant dense<0.000000e+00> : vector<64x128xf32>
    %17 = tpu.matmul %15, %16, %cst_15 {dimension_numbers = #tpu.dot_dimension_numbers<[1], [0], [0], [1], [0, 0, 1, 1], [], []>} : vector<64x8xbf16>, vector<8x128xbf16>, vector<64x128xf32> -> vector<64x128xf32>
    %18 = arith.addf %12, %17 : vector<64x128xf32>
    %c0_16 = arith.constant 0 : index
    %c1_17 = arith.constant 1 : index
    %c0_18 = arith.constant 0 : index
    %c0_19 = arith.constant 0 : index
    %19 = vector.load %arg1[%c0_16, %c1_17, %c0_18, %c0_19] : memref<1x10x10x8xbf16, #tpu.memory_space<vmem>>, vector<1x8x8x8xbf16>
    %20 = vector.shape_cast %19 : vector<1x8x8x8xbf16> to vector<8x8x8xbf16>
    %21 = vector.shape_cast %20 : vector<8x8x8xbf16> to vector<64x8xbf16>
    %c24 = arith.constant 24 : index
    %c0_20 = arith.constant 0 : index
    %22 = vector.load %arg2[%c24, %c0_20] : memref<72x128xbf16, #tpu.memory_space<vmem>>, vector<8x128xbf16>
    %cst_21 = arith.constant dense<0.000000e+00> : vector<64x128xf32>
    %23 = tpu.matmul %21, %22, %cst_21 {dimension_numbers = #tpu.dot_dimension_numbers<[1], [0], [0], [1], [0, 0, 1, 1], [], []>} : vector<64x8xbf16>, vector<8x128xbf16>, vector<64x128xf32> -> vector<64x128xf32>
    %24 = arith.addf %18, %23 : vector<64x128xf32>
    %c0_22 = arith.constant 0 : index
    %c1_23 = arith.constant 1 : index
    %c1_24 = arith.constant 1 : index
    %c0_25 = arith.constant 0 : index
    %25 = vector.load %arg1[%c0_22, %c1_23, %c1_24, %c0_25] : memref<1x10x10x8xbf16, #tpu.memory_space<vmem>>, vector<1x8x8x8xbf16>
    %26 = vector.shape_cast %25 : vector<1x8x8x8xbf16> to vector<8x8x8xbf16>
    %27 = vector.shape_cast %26 : vector<8x8x8xbf16> to vector<64x8xbf16>
    %c32 = arith.constant 32 : index
    %c0_26 = arith.constant 0 : index
    %28 = vector.load %arg2[%c32, %c0_26] : memref<72x128xbf16, #tpu.memory_space<vmem>>, vector<8x128xbf16>
    %cst_27 = arith.constant dense<0.000000e+00> : vector<64x128xf32>
    %29 = tpu.matmul %27, %28, %cst_27 {dimension_numbers = #tpu.dot_dimension_numbers<[1], [0], [0], [1], [0, 0, 1, 1], [], []>} : vector<64x8xbf16>, vector<8x128xbf16>, vector<64x128xf32> -> vector<64x128xf32>
    %30 = arith.addf %24, %29 : vector<64x128xf32>
    %c0_28 = arith.constant 0 : index
    %c1_29 = arith.constant 1 : index
    %c2_30 = arith.constant 2 : index
    %c0_31 = arith.constant 0 : index
    %31 = vector.load %arg1[%c0_28, %c1_29, %c2_30, %c0_31] : memref<1x10x10x8xbf16, #tpu.memory_space<vmem>>, vector<1x8x8x8xbf16>
    %32 = vector.shape_cast %31 : vector<1x8x8x8xbf16> to vector<8x8x8xbf16>
    %33 = vector.shape_cast %32 : vector<8x8x8xbf16> to vector<64x8xbf16>
    %c40 = arith.constant 40 : index
    %c0_32 = arith.constant 0 : index
    %34 = vector.load %arg2[%c40, %c0_32] : memref<72x128xbf16, #tpu.memory_space<vmem>>, vector<8x128xbf16>
    %cst_33 = arith.constant dense<0.000000e+00> : vector<64x128xf32>
    %35 = tpu.matmul %33, %34, %cst_33 {dimension_numbers = #tpu.dot_dimension_numbers<[1], [0], [0], [1], [0, 0, 1, 1], [], []>} : vector<64x8xbf16>, vector<8x128xbf16>, vector<64x128xf32> -> vector<64x128xf32>
    %36 = arith.addf %30, %35 : vector<64x128xf32>
    %c0_34 = arith.constant 0 : index
    %c2_35 = arith.constant 2 : index
    %c0_36 = arith.constant 0 : index
    %c0_37 = arith.constant 0 : index
    %37 = vector.load %arg1[%c0_34, %c2_35, %c0_36, %c0_37] : memref<1x10x10x8xbf16, #tpu.memory_space<vmem>>, vector<1x8x8x8xbf16>
    %38 = vector.shape_cast %37 : vector<1x8x8x8xbf16> to vector<8x8x8xbf16>
    %39 = vector.shape_cast %38 : vector<8x8x8xbf16> to vector<64x8xbf16>
    %c48 = arith.constant 48 : index
    %c0_38 = arith.constant 0 : index
    %40 = vector.load %arg2[%c48, %c0_38] : memref<72x128xbf16, #tpu.memory_space<vmem>>, vector<8x128xbf16>
    %cst_39 = arith.constant dense<0.000000e+00> : vector<64x128xf32>
    %41 = tpu.matmul %39, %40, %cst_39 {dimension_numbers = #tpu.dot_dimension_numbers<[1], [0], [0], [1], [0, 0, 1, 1], [], []>} : vector<64x8xbf16>, vector<8x128xbf16>, vector<64x128xf32> -> vector<64x128xf32>
    %42 = arith.addf %36, %41 : vector<64x128xf32>
    %c0_40 = arith.constant 0 : index
    %c2_41 = arith.constant 2 : index
    %c1_42 = arith.constant 1 : index
    %c0_43 = arith.constant 0 : index
    %43 = vector.load %arg1[%c0_40, %c2_41, %c1_42, %c0_43] : memref<1x10x10x8xbf16, #tpu.memory_space<vmem>>, vector<1x8x8x8xbf16>
    %44 = vector.shape_cast %43 : vector<1x8x8x8xbf16> to vector<8x8x8xbf16>
    %45 = vector.shape_cast %44 : vector<8x8x8xbf16> to vector<64x8xbf16>
    %c56 = arith.constant 56 : index
    %c0_44 = arith.constant 0 : index
    %46 = vector.load %arg2[%c56, %c0_44] : memref<72x128xbf16, #tpu.memory_space<vmem>>, vector<8x128xbf16>
    %cst_45 = arith.constant dense<0.000000e+00> : vector<64x128xf32>
    %47 = tpu.matmul %45, %46, %cst_45 {dimension_numbers = #tpu.dot_dimension_numbers<[1], [0], [0], [1], [0, 0, 1, 1], [], []>} : vector<64x8xbf16>, vector<8x128xbf16>, vector<64x128xf32> -> vector<64x128xf32>
    %48 = arith.addf %42, %47 : vector<64x128xf32>
    %c0_46 = arith.constant 0 : index
    %c2_47 = arith.constant 2 : index
    %c2_48 = arith.constant 2 : index
    %c0_49 = arith.constant 0 : index
    %49 = vector.load %arg1[%c0_46, %c2_47, %c2_48, %c0_49] : memref<1x10x10x8xbf16, #tpu.memory_space<vmem>>, vector<1x8x8x8xbf16>
    %50 = vector.shape_cast %49 : vector<1x8x8x8xbf16> to vector<8x8x8xbf16>
    %51 = vector.shape_cast %50 : vector<8x8x8xbf16> to vector<64x8xbf16>
    %c64 = arith.constant 64 : index
    %c0_50 = arith.constant 0 : index
    %52 = vector.load %arg2[%c64, %c0_50] : memref<72x128xbf16, #tpu.memory_space<vmem>>, vector<8x128xbf16>
    %cst_51 = arith.constant dense<0.000000e+00> : vector<64x128xf32>
    %53 = tpu.matmul %51, %52, %cst_51 {dimension_numbers = #tpu.dot_dimension_numbers<[1], [0], [0], [1], [0, 0, 1, 1], [], []>} : vector<64x8xbf16>, vector<8x128xbf16>, vector<64x128xf32> -> vector<64x128xf32>
    %54 = arith.addf %48, %53 : vector<64x128xf32>
    %c0_52 = arith.constant 0 : index
    %c0_53 = arith.constant 0 : index
    %55 = vector.load %arg3[%c0_52, %c0_53] : memref<1x128xf32, #tpu.memory_space<vmem>>, vector<1x128xf32>
    %56 = vector.broadcast %55 : vector<1x128xf32> to vector<64x128xf32>
    %57 = arith.addf %54, %56 : vector<64x128xf32>
    %c0_54 = arith.constant 0 : index
    %c0_55 = arith.constant 0 : index
    %c0_56 = arith.constant 0 : index
    %58 = vector.load %arg4[%c0_54, %c0_55, %c0_56] : memref<1x64x4xbf16, #tpu.memory_space<vmem>>, vector<1x64x4xbf16>
    %59 = vector.shape_cast %58 : vector<1x64x4xbf16> to vector<64x4xbf16>
    %c0_57 = arith.constant 0 : index
    %c0_58 = arith.constant 0 : index
    %60 = vector.load %arg5[%c0_57, %c0_58] : memref<4x128xbf16, #tpu.memory_space<vmem>>, vector<4x128xbf16>
    %cst_59 = arith.constant dense<0.000000e+00> : vector<64x128xf32>
    %61 = tpu.matmul %59, %60, %cst_59 {dimension_numbers = #tpu.dot_dimension_numbers<[1], [0], [0], [1], [0, 0, 1, 1], [], []>} : vector<64x4xbf16>, vector<4x128xbf16>, vector<64x128xf32> -> vector<64x128xf32>
    %62 = arith.addf %57, %61 : vector<64x128xf32>
    %c0_60 = arith.constant 0 : index
    %c0_61 = arith.constant 0 : index
    %63 = vector.load %arg6[%c0_60, %c0_61] : memref<1x128xf32, #tpu.memory_space<vmem>>, vector<1x128xf32>
    %64 = vector.broadcast %63 : vector<1x128xf32> to vector<64x128xf32>
    %65 = arith.addf %62, %64 : vector<64x128xf32>
    %cst_62 = arith.constant 0.000000e+00 : f32
    %66 = vector.broadcast %cst_62 : f32 to vector<64x128xf32>
    %67 = arith.maximumf %65, %66 : vector<64x128xf32>
    %c0_63 = arith.constant 0 : index
    %c0_64 = arith.constant 0 : index
    %c0_65 = arith.constant 0 : index
    %68 = vector.load %arg7[%c0_63, %c0_64, %c0_65] : memref<1x64x128xf32, #tpu.memory_space<vmem>>, vector<1x64x128xf32>
    %69 = vector.shape_cast %68 : vector<1x64x128xf32> to vector<64x128xf32>
    %70 = vector.shape_cast %67 : vector<64x128xf32> to vector<1x64x128xf32>
    tpu.vector_store %arg7[%c0_63, %c0_64, %c0_65], %70 {strides = array<i32>} : memref<1x64x128xf32, #tpu.memory_space<vmem>>, vector<1x64x128xf32>,
    return
  }
  func.func @transform_0(%arg0: i32) -> (i32, i32, i32, i32) {
    %c0_i32 = arith.constant 0 : i32
    %c0_i32_0 = arith.constant 0 : i32
    %c0_i32_1 = arith.constant 0 : i32
    %c0_i32_2 = arith.constant 0 : i32
    return %arg0, %c0_i32, %c0_i32_0, %c0_i32_1 : i32, i32, i32, i32
  }
  func.func @transform_1(%arg0: i32) -> (i32, i32) {
    %c0_i32 = arith.constant 0 : i32
    %c0_i32_0 = arith.constant 0 : i32
    %c0_i32_1 = arith.constant 0 : i32
    return %c0_i32, %c0_i32_0 : i32, i32
  }
  func.func @transform_2(%arg0: i32) -> (i32, i32) {
    %c0_i32 = arith.constant 0 : i32
    %c0_i32_0 = arith.constant 0 : i32
    %c0_i32_1 = arith.constant 0 : i32
    return %c0_i32, %c0_i32_0 : i32, i32
  }
  func.func @transform_3(%arg0: i32) -> (i32, i32, i32) {
    %c0_i32 = arith.constant 0 : i32
    %c0_i32_0 = arith.constant 0 : i32
    %c0_i32_1 = arith.constant 0 : i32
    return %arg0, %c0_i32, %c0_i32_0 : i32, i32, i32
  }
  func.func @transform_4(%arg0: i32) -> (i32, i32) {
    %c0_i32 = arith.constant 0 : i32
    %c0_i32_0 = arith.constant 0 : i32
    %c0_i32_1 = arith.constant 0 : i32
    return %c0_i32, %c0_i32_0 : i32, i32
  }
  func.func @transform_5(%arg0: i32) -> (i32, i32) {
    %c0_i32 = arith.constant 0 : i32
    %c0_i32_0 = arith.constant 0 : i32
    %c0_i32_1 = arith.constant 0 : i32
    return %c0_i32, %c0_i32_0 : i32, i32
  }
  func.func @transform_6(%arg0: i32) -> (i32, i32, i32) {
    %c0_i32 = arith.constant 0 : i32
    %c0_i32_0 = arith.constant 0 : i32
    %c0_i32_1 = arith.constant 0 : i32
    return %arg0, %c0_i32, %c0_i32_0 : i32, i32, i32
  }
}

module attributes {stable_mosaic.version = 11 : i64} {
  func.func @_matmul_bias_kernel(%arg0: i32, %arg1: memref<64x36xbf16, #tpu.memory_space<vmem>>, %arg2: memref<36x8xbf16, #tpu.memory_space<vmem>>, %arg3: memref<1x8xf32, #tpu.memory_space<vmem>>, %arg4: memref<64x8xbf16, #tpu.memory_space<vmem>>) attributes {dimension_semantics = [#tpu.dimension_semantics<parallel>], iteration_bounds = array<i64: 2>, scalar_prefetch = 0 : i64, scratch_operands = 0 : i64, tpu.core_type = #tpu.core_type<tc>, window_params = [{transform_indices = @transform_0, window_bounds = array<i64: 64, 36>}, {pipeline_mode = #tpu.pipeline_mode<synchronous>, transform_indices = @transform_1, window_bounds = array<i64: 36, 8>}, {pipeline_mode = #tpu.pipeline_mode<synchronous>, transform_indices = @transform_2, window_bounds = array<i64: 1, 8>}, {transform_indices = @transform_3, window_bounds = array<i64: 64, 8>}]} {
    %c0 = arith.constant 0 : index
    %c0_0 = arith.constant 0 : index
    %0 = vector.load %arg1[%c0, %c0_0] : memref<64x36xbf16, #tpu.memory_space<vmem>>, vector<64x36xbf16>
    %c0_1 = arith.constant 0 : index
    %c0_2 = arith.constant 0 : index
    %1 = vector.load %arg2[%c0_1, %c0_2] : memref<36x8xbf16, #tpu.memory_space<vmem>>, vector<36x8xbf16>
    %cst = arith.constant dense<0.000000e+00> : vector<64x8xf32>
    %2 = tpu.matmul %0, %1, %cst {dimension_numbers = #tpu.dot_dimension_numbers<[1], [0], [0], [1], [0, 0, 1, 1], [], []>} : vector<64x36xbf16>, vector<36x8xbf16>, vector<64x8xf32> -> vector<64x8xf32>
    %c0_3 = arith.constant 0 : index
    %c0_4 = arith.constant 0 : index
    %3 = vector.load %arg3[%c0_3, %c0_4] : memref<1x8xf32, #tpu.memory_space<vmem>>, vector<1x8xf32>
    %4 = vector.broadcast %3 : vector<1x8xf32> to vector<64x8xf32>
    %5 = arith.addf %2, %4 : vector<64x8xf32>
    %cst_5 = arith.constant 0.000000e+00 : f32
    %6 = vector.broadcast %cst_5 : f32 to vector<64x8xf32>
    %7 = arith.maximumf %5, %6 : vector<64x8xf32>
    %8 = arith.truncf %7 : vector<64x8xf32> to vector<64x8xbf16>
    %c0_6 = arith.constant 0 : index
    %c0_7 = arith.constant 0 : index
    %9 = vector.load %arg4[%c0_6, %c0_7] : memref<64x8xbf16, #tpu.memory_space<vmem>>, vector<64x8xbf16>
    tpu.vector_store %arg4[%c0_6, %c0_7], %8 {strides = array<i32>} : memref<64x8xbf16, #tpu.memory_space<vmem>>, vector<64x8xbf16>,
    return
  }
  func.func @transform_0(%arg0: i32) -> (i32, i32) {
    %c0_i32 = arith.constant 0 : i32
    %c0_i32_0 = arith.constant 0 : i32
    return %arg0, %c0_i32 : i32, i32
  }
  func.func @transform_1(%arg0: i32) -> (i32, i32) {
    %c0_i32 = arith.constant 0 : i32
    %c0_i32_0 = arith.constant 0 : i32
    %c0_i32_1 = arith.constant 0 : i32
    return %c0_i32, %c0_i32_0 : i32, i32
  }
  func.func @transform_2(%arg0: i32) -> (i32, i32) {
    %c0_i32 = arith.constant 0 : i32
    %c0_i32_0 = arith.constant 0 : i32
    %c0_i32_1 = arith.constant 0 : i32
    return %c0_i32, %c0_i32_0 : i32, i32
  }
  func.func @transform_3(%arg0: i32) -> (i32, i32) {
    %c0_i32 = arith.constant 0 : i32
    %c0_i32_0 = arith.constant 0 : i32
    return %arg0, %c0_i32 : i32, i32
  }
}

</mosaic_0001>

<bundles_post_ra>
// kernel: basic_block_forward.2
= control target key start
LH: loop header
LB: loop body
LE: loop exit
PB: predicated region body
PF: predicated region fallthrough
CT: control target
= control target key end

     0   :  { %s528_s12 = smov 0   ;;  %s572_s0 = inlined_call_operand.vmem [shape: bf16[128,36], index: 0, kind: input, shape index: {}]   ;;  %s573_s1 = inlined_call_operand.vmem [shape: bf16[36,8], index: 1, kind: input, shape index: {}]   ;;  %s574_s2 = inlined_call_operand.vmem [shape: f32[1,8], index: 2, kind: input, shape index: {}]   ;;  %s575_s3 = inlined_call_operand.vmem [shape: bf16[128,8], index: 3, kind: output, shape index: {}]  }
   0x1 LB: > { %s417_s13 = sadd.s32 4294967295, %s506_s12   ;;  %p421_p0 = scmp.ge.s32.totalorder %s506_s12, 1  ;;  %s506_s12 = sphi %s528_s12, %s13_s12  }
   0x2   : > { %p138_p1 = scmp.lt.s32.totalorder %s506_s12, 3 }
   0x4   : > { %p139_p2 = pnand %p421_p0, %p138_p1 }
   0x5   : > { %v493_v0 = vld [vmem:[%s573_s1] sm:$0xff] (!%p139_p2)   ;;  %v494_v1 = vld [vmem:[%s573_s1 + $0x8] sm:$0xff] (!%p139_p2)   ;;  %s422_s18 = sshll.u32 (!%p139_p2), %s417_s13, 3  ;;  %v495_v2 = vld [vmem:[%s573_s1 + $0x10] ss:$0 sps:$4 sm:$0x33] (!%p139_p2)  }
   0x6   : > { %142 = sbr.rel (%p139_p2) target bundleno = 240 (0xf0), region = 32  ;;  %463 = vmatprep.subr.bf16.mxu0 (!%p139_p2), %v493_v0  ;;  %477 = vmatprep.subr.bf16.mxu1 (!%p139_p2), %v493_v0  ;;  %p163_p3 = scmp.lt.s32.totalorder (!%p139_p2), %s422_s18, 15  ;;  %vm243_vm0 = vcmask (!%p139_p2), 1041408   ;;  %vm230_vm1 = vcmask (!%p139_p2), 293888   ;;  %v426_v8 = vld [vmem:[%s574_s2] ss:$0 sm:$0xff] (!%p139_p2) }
   0x7   : > { %464 = vmatpush3.bf16.msra.mxu0 (!%p139_p2), %v493_v0  ;;  %480 = vmatpush3.bf16.msra.mxu1 (!%p139_p2), %v493_v0  ;;  %v245_v3 = vsel (!%p139_p2), %vm243_vm0, %v495_v2, 0  ;;  %vm352_vm2 = vcmask (!%p139_p2), 60416  }
   0x8   : > { %465 = vmatprep.subr.bf16.mxu0 (!%p139_p2), %v494_v1  ;;  %478 = vmatprep.subr.bf16.mxu1 (!%p139_p2), %v494_v1 }
   0xb   : > { %466 = vmatpush3.bf16.msra.mxu0 (!%p139_p2), %v494_v1  ;;  %481 = vmatpush3.bf16.msra.mxu1 (!%p139_p2), %v494_v1 }
   0xc   : > { %483 = vmatprep.subr.msk.bf16.mxu0 (!%p139_p2), %vm243_vm0, %v495_v2  ;;  %484 = vmatprep.subr.msk.bf16.mxu1 (!%p139_p2), %vm243_vm0, %v495_v2 }
   0xd   : > { %s577_s18 = smov (!%p163_p3, %s422_s18), 15 }
   0xe   : > { %s423_s21 = sshll.u32 %s577_s18, 2 }
   0xf   : > { %s166_s24 = scalar_lea.vmem %s572_s0, %s423_s21  ;;  %468 = vmatpush3.bf16.msra.mxu0 %v245_v3  ;;  %482 = vmatpush3.bf16.msra.mxu1 %v245_v3  ;;  %s172_s29 = scalar_lea.vmem %s575_s3, %s423_s21 }
  0x10   : > { %v496_v4 = vld [vmem:[%s166_s24] sm:$0xff]   ;;  %v497_v5 = vld [vmem:[%s166_s24 + $0x10] sm:$0xff]   ;;  %v498_v6 = vld [vmem:[%s166_s24 + $0x8] sm:$0xff]  }
  0x11   : > { %469 = vmatprep.mubr.msk.bf16.mxu0 %vm230_vm1, %v496_v4  ;;  %v499_v7 = vld [vmem:[%s166_s24 + $0x18] sm:$0xff]   ;;  %473 = vmatprep.mubr.msk.bf16.mxu1 %vm230_vm1, %v497_v5 }
  0x12   : > { %470 = vmatmul.mubr.msk.bf16.vlgmr.msra.gmra.mrb[0].mxu0 %vm230_vm1, %v498_v6  ;;  %474 = vmatmul.mubr.msk.bf16.vlgmr.msra.gmra.mrb[0].mxu1 %vm230_vm1, %v499_v7 }
  0xe5   : > { %v471_v9 = vpop.f32.mrb[0].mxu0  ;;  %v475_v10 = vpop.f32.mrb[0].mxu1 }
  0xe6   : > { %v290_v11 = vadd.f32 %v471_v9, %v426_v8  ;;  %v306_v12 = vadd.f32 %v475_v10, %v426_v8  ;;  %v281_v13 = vpop.f32.mrb[1].mxu0  ;;  %v297_v14 = vpop.f32.mrb[1].mxu1 }
  0xe7   : > { %v282_v15 = vadd.f32 %v426_v8, %v281_v13  ;;  %v298_v16 = vadd.f32 %v426_v8, %v297_v14  ;;  %v472_v17 = vpop.f32.mrb[2].mxu0  ;;  %v476_v18 = vpop.f32.mrb[2].mxu1 }
  0xe8   : > { %v314_v19 = vmax.f32 %v290_v11, 0.0  ;;  %v318_v20 = vmax.f32 %v306_v12, 0.0  ;;  %v293_v21 = vadd.f32 %v472_v17, %v426_v8  ;;  %v309_v22 = vadd.f32 %v476_v18, %v426_v8  ;;  %v284_v23 = vpop.f32.mrb[3].mxu0  ;;  %v300_v24 = vpop.f32.mrb[3].mxu1 }
  0xe9   : > { %v312_v25 = vmax.f32 %v282_v15, 0.0  ;;  %v316_v26 = vmax.f32 %v298_v16, 0.0  ;;  %v285_v27 = vadd.f32 %v426_v8, %v284_v23  ;;  %v301_v28 = vadd.f32 %v426_v8, %v300_v24 }
  0xea   : > { %v450_v29 = vpack.c.bf16 %v314_v19, %v314_v19  ;;  %v454_v30 = vpack.c.bf16 %v318_v20, %v318_v20  ;;  %v315_v31 = vmax.f32 %v293_v21, 0.0  ;;  %v319_v32 = vmax.f32 %v309_v22, 0.0 }
  0xeb   : > { %v448_v33 = vpack.c.bf16 %v312_v25, %v312_v25  ;;  %v452_v34 = vpack.c.bf16 %v316_v26, %v316_v26  ;;  %v313_v35 = vmax.f32 %v285_v27, 0.0  ;;  %v317_v36 = vmax.f32 %v301_v28, 0.0 }
  0xec   : > { %355 = vst.msk [vmem:[%s172_s29 + $0x8] sm:$0xf] %vm352_vm2, %v450_v29  ;;  %359 = vst.msk [vmem:[%s172_s29 + $0x18] sm:$0xf] %vm352_vm2, %v454_v30  ;;  %v451_v37 = vpack.c.bf16 %v315_v31, %v315_v31  ;;  %v455_v38 = vpack.c.bf16 %v319_v32, %v319_v32 }
  0xed   : > { %353 = vst.msk [vmem:[%s172_s29] sm:$0xf] %vm352_vm2, %v448_v33  ;;  %357 = vst.msk [vmem:[%s172_s29 + $0x10] sm:$0xf] %vm352_vm2, %v452_v34  ;;  %v449_v39 = vpack.c.bf16 %v313_v35, %v313_v35  ;;  %v453_v40 = vpack.c.bf16 %v317_v36, %v317_v36 }
  0xee   : > { %356 = vst.msk [vmem:[%s172_s29 + $0xc] sm:$0xf] %vm352_vm2, %v451_v37  ;;  %360 = vst.msk [vmem:[%s172_s29 + $0x1c] sm:$0xf] %vm352_vm2, %v455_v38 }
  0xef   : > { %354 = vst.msk [vmem:[%s172_s29 + $0x4] sm:$0xf] %vm352_vm2, %v449_v39  ;;  %358 = vst.msk [vmem:[%s172_s29 + $0x14] sm:$0xf] %vm352_vm2, %v453_v40 }
  0xf0 PF: > { %s13_s12 = sadd.s32 1, %s506_s12  }
  0xf1   : > { %p10_p4 = scmp.ge.s32.totalorder %s13_s12, 4  }
  0xf3   :  { %12 = sbr.rel (!%p10_p4) target bundleno = 1 (0x1), region = 62 }

// kernel: basic_block_forward.3
= control target key start
LH: loop header
LB: loop body
LE: loop exit
PB: predicated region body
PF: predicated region fallthrough
CT: control target
= control target key end

     0   :  { %s2492_s21 = smov 0   ;;  %s3033_s0 = inlined_call_operand.vmem [shape: bf16[2,10,10,8], index: 0, kind: input, shape index: {}]   ;;  %s3034_s1 = inlined_call_operand.vmem [shape: bf16[72,128], index: 1, kind: input, shape index: {}]   ;;  %s3035_s2 = inlined_call_operand.vmem [shape: f32[1,128], index: 2, kind: input, shape index: {}]   ;;  %s3036_s3 = inlined_call_operand.vmem [shape: bf16[2,64,4], index: 3, kind: input, shape index: {}]   ;;  %s3037_s4 = inlined_call_operand.vmem [shape: bf16[4,128], index: 4, kind: input, shape index: {}]   ;;  %s3038_s5 = inlined_call_operand.vmem [shape: f32[1,128], index: 5, kind: input, shape index: {}]   ;;  %s3039_s6 = inlined_call_operand.vmem [shape: f32[2,64,128], index: 6, kind: output, shape index: {}]  }
   0x1 LB: > { %s2000_s22 = sadd.s32 4294967295, %s2455_s21   ;;  %p2004_p0 = scmp.ge.s32.totalorder %s2455_s21, 1  ;;  %s2455_s21 = sphi %s2492_s21, %s16_s21  }
   0x2   : > { %p222_p1 = scmp.lt.s32.totalorder %s2455_s21, 3 }
   0x4   : > { %p223_p2 = pnand %p2004_p0, %p222_p1 }
   0x5   : > { %vm431_vm0 = vcmask (!%p223_p2), 1043456   ;;  %v1163_v0 = vld [vmem:[%s3034_s1 + $0x14] sm:$0xf] (!%p223_p2)  ;;  %p257_p3 = scmp.lt.s32.totalorder (!%p223_p2), %s2000_s22, 1  ;;  %v405_v2 = vld [vmem:[%s3034_s1 + $0x4] sm:$0xf] (!%p223_p2) }
   0x6   : > { %226 = sbr.rel (%p223_p2) target bundleno = 342 (0x156), region = 44  ;;  %2419 = vmatprep.subr.msk.bf16.mxu0 (!%p223_p2), %vm431_vm0, %v1163_v0  ;;  %v1189_v1 = vsel (!%p223_p2), %vm431_vm0, %v1163_v0, 0  ;;  %2414 = vmatprep.subr.msk.bf16.mxu1 (!%p223_p2), %vm431_vm0, %v405_v2  ;;  %v433_v3 = vsel (!%p223_p2), %vm431_vm0, %v405_v2, 0  ;;  %v281_v4 = vld [vmem:[%s3034_s1] sm:$0xf] (!%p223_p2)  ;;  %vm624_vm1 = vcmask (!%p223_p2), 1042432  }
   0x7   : > { %2285 = vmatpush3.bf16.msra.mxu0 (!%p223_p2), %v1189_v1  ;;  %vm625_vm2 = vcmask (!%p223_p2), 1046532   ;;  %2235 = vmatpush3.bf16.msra.mxu1 (!%p223_p2), %v433_v3  ;;  %v1273_v5 = vld [vmem:[%s3034_s1 + $0x18] sm:$0xf] (!%p223_p2)  ;;  %v2521_v6 = vld [vmem:[%s3034_s1 + $0x8] sm:$0xf] (!%p223_p2)  ;;  %vm418_vm3 = vcmask (!%p223_p2), 64512  }
   0x8   : > { %2415 = vmatprep.subr.msk.bf16.mxu1 (!%p223_p2), %vm431_vm0, %v281_v4  ;;  %2420 = vmatprep.subr.msk.bf16.mxu0 (!%p223_p2), %vm431_vm0, %v1273_v5  ;;  %v2529_v7 = vld [vmem:[%s3034_s1 + $0x1c] sm:$0xf] (!%p223_p2)  ;;  %v2532_v8 = vsel (!%p223_p2), %vm431_vm0, %v281_v4, 0  ;;  %v2537_v9 = vld [vmem:[%s3034_s1 + $0xc] sm:$0xf] (!%p223_p2)  ;;  %vm2544_vm4 = vmor (!%p223_p2), %vm624_vm1, %vm625_vm2  ;;  %v2549_v11 = vsel (!%p223_p2), %vm431_vm0, %v1273_v5, 0 }
   0x9   : > { %v2553_v12 = vsel (!%p223_p2), %vm431_vm0, %v2521_v6, 0  ;;  %v2557_v13 = vsel (!%p223_p2), %vm431_vm0, %v2529_v7, 0  ;;  %v2561_v14 = vsel (!%p223_p2), %vm431_vm0, %v2537_v9, 0  ;;  %v2566_v15 = vld [vmem:[%s3034_s1 + $0x20] sm:$0xf] (!%p223_p2)  ;;  %vm1825_vm8 = vcmask (!%p223_p2), 1041408  }
   0xa   : > { %vm290_vm5 = vsmask.f32 (!%p223_p2), 3328  ;;  %vm291_vm6 = vsmask.f32 (!%p223_p2), 7440  ;;  %v2581_v32 = vsel (!%p223_p2), %vm431_vm0, %v2566_v15, 0  ;;  %vm1812_vm9 = vcmask (!%p223_p2), 31744  }
   0xb   : > { %vm2636_vm7 = vmor (!%p223_p2), %vm290_vm5, %vm291_vm6 }
   0xd   : > { %s3047_s22 = smov (!%p257_p3, %s2000_s22), 1 }
   0xe   : > { %s2424_s9 = smul.u32 80, %s3047_s22  ;;  %s2182_s23 = sshll.u32 %s3047_s22, 5 }
   0xf   : > { %s2917_s28 = scalar_lea.vmem %s3036_s3, %s2182_s23 }
  0x10   : > { %s2542_s16 = scalar_lea.vmem %s3033_s0, %s2424_s9  ;;  %s2183_s9 = sshll.u32 %s3047_s22, 6 }
  0x11   : > { %v2059_v16 = vld [vmem:[%s2542_s16 + $0xc] sm:$0x1]  ;;  %v2061_v17 = vld [vmem:[%s2542_s16 + $0x14] sm:$0x1]  ;;  %v2082_v18 = vld [vmem:[%s2542_s16 + $0x8] sm:$0xe]  ;;  %s3020_s12 = scalar_lea.vmem %s3039_s6, %s2183_s9 }
  0x12   : > { %v904_v19 = vshll.u32 %v2059_v16, 16  ;;  %v918_v20 = vshll.u32 %v2061_v17, 16  ;;  %v2083_v21 = vld [vmem:[%s2542_s16 + $0x10] sm:$0xe]  ;;  %v2090_v22 = vrot.slane %v2082_v18, 9  ;;  %v1133_v23 = vrot.slane %v2059_v16, 5 }
  0x13   : > { %v2091_v24 = vrot.slane %v2083_v21, 9  ;;  %v1137_v25 = vrot.slane %v2061_v17, 5  ;;  %v2063_v26 = vld [vmem:[%s2542_s16 + $0x1c] sm:$0x1]  ;;  %v2065_v27 = vld [vmem:[%s2542_s16 + $0x24] sm:$0x1] }
  0x14   : > { %v2574_v28 = vrot.slane %v904_v19, 5  ;;  %v1134_v29 = vsel %vm2544_vm4, %v2090_v22, %v1133_v23  ;;  %v932_v30 = vshll.u32 %v2063_v26, 16  ;;  %v2084_v31 = vld [vmem:[%s2542_s16 + $0x18] sm:$0xe]  ;;  %v2583_v33 = vrot.slane %v918_v20, 5 }
  0x15   : > { %v1138_v34 = vsel %vm2544_vm4, %v2091_v24, %v1137_v25  ;;  %v2085_v35 = vld [vmem:[%s2542_s16 + $0x20] sm:$0xe]  ;;  %v2092_v36 = vrot.slane %v2084_v31, 9  ;;  %v1141_v37 = vrot.slane %v2063_v26, 5  ;;  %v946_v39 = vshll.u32 %v2065_v27, 16 }
  0x16   : > { %v2098_v38 = vcombine.low %v1134_v29, %v1138_v34  ;;  %v2093_v40 = vrot.slane %v2085_v35, 9  ;;  %v1145_v41 = vrot.slane %v2065_v27, 5  ;;  %v2589_v42 = vld [vmem:[%s2542_s16] sm:$0xf]  ;;  %v2591_v43 = vrot.slane %v932_v30, 5 }
  0x17   : > { %v1142_v44 = vsel %vm2544_vm4, %v2092_v36, %v1141_v37  ;;  %v2596_v45 = vld [vmem:[%s2542_s16 + $0x8] sm:$0xf]  ;;  %v2599_v46 = vld [vmem:[%s2542_s16 + $0x4] sm:$0x1]  ;;  %v294_v47 = vshrl.u32 %v2589_v42, 16  ;;  %v297_v50 = vshll.u32 %v2589_v42, 16 }
  0x18   : > { %2286 = vmatprep.mubr.msk.bf16.mxu0 %vm418_vm3, %v2098_v38  ;;  %v1146_v48 = vsel %vm2544_vm4, %v2093_v40, %v1145_v41  ;;  %v2606_v49 = vld [vmem:[%s2542_s16 + $0xc] sm:$0x1]  ;;  %v303_v51 = vshll.u32 %v2599_v46, 16  ;;  %v308_v52 = vshrl.u32 %v2596_v45, 16  ;;  %v311_v55 = vshll.u32 %v2596_v45, 16 }
  0x19   : > { %v2099_v53 = vcombine.low %v1142_v44, %v1146_v48  ;;  %v296_v54 = vrot.slane %v294_v47, 4  ;;  %v317_v56 = vshll.u32 %v2606_v49, 16  ;;  %v2614_v57 = vld [vmem:[%s2542_s16 + $0x10] sm:$0xf]  ;;  %v2616_v58 = vrot.slane %v946_v39, 5 }
  0x1a   : > { %v299_v59 = vrot.slane %v297_v50, 5  ;;  %v305_v60 = vrot.slane %v303_v51, 5  ;;  %v310_v61 = vrot.slane %v308_v52, 4  ;;  %v2619_v62 = vld [vmem:[%s2542_s16 + $0x18] sm:$0xf]  ;;  %v313_v63 = vrot.slane %v311_v55, 5 }
  0x1b   : > { %2287 = vmatmul.mubr.msk.bf16.vlgmr.msra.gmra.mrb[0].mxu0 %vm418_vm3, %v2099_v53  ;;  %v319_v0 = vrot.slane %v317_v56, 5  ;;  %v629_v1 = vrot.slane %v2599_v46, 5  ;;  %v2624_v2 = vld [vmem:[%s2542_s16 + $0x14] sm:$0x1]  ;;  %v322_v3 = vshrl.u32 %v2614_v57, 16  ;;  %v325_v16 = vshll.u32 %v2614_v57, 16 }
  0x1c   : > { %v300_v4 = vor.u32 %v299_v59, %v296_v54  ;;  %v2628_v5 = vld [vmem:[%s2542_s16 + $0x1c] sm:$0x1]  ;;  %v331_v17 = vshll.u32 %v2624_v2, 16  ;;  %v336_v18 = vshrl.u32 %v2619_v62, 16  ;;  %2295 = vmatpush3.bf16.msra.mxu0 %v2549_v11  ;;  %v314_v20 = vor.u32 %v313_v63, %v310_v61  ;;  %v2643_v24 = vld [vmem:[%s2542_s16 + $0x2c] sm:$0x1] }
  0x1d   : > { %v324_v21 = vrot.slane %v322_v3, 4  ;;  %v339_v22 = vshll.u32 %v2619_v62, 16  ;;  %v345_v23 = vshll.u32 %v2628_v5, 16  ;;  %2421 = vmatprep.subr.msk.bf16.mxu0 %vm431_vm0, %v2529_v7  ;;  %v633_v25 = vrot.slane %v2606_v49, 5  ;;  %v2649_v29 = vld [vmem:[%s2542_s16 + $0x34] sm:$0x1] }
  0x1e   : > { %v301_v11 = vrot.slane %v300_v4, 4  ;;  %v327_v26 = vrot.slane %v325_v16, 5  ;;  %v338_v27 = vrot.slane %v336_v18, 4  ;;  %v315_v30 = vrot.slane %v314_v20, 4  ;;  %v2086_v36 = vld [vmem:[%s2542_s16 + $0x28] sm:$0xe] }
  0x1f   : > { %v333_v31 = vrot.slane %v331_v17, 5  ;;  %v341_v34 = vrot.slane %v339_v22, 5  ;;  %v347_v35 = vrot.slane %v345_v23, 5  ;;  %v637_v38 = vrot.slane %v2624_v2, 5  ;;  %v2087_v39 = vld [vmem:[%s2542_s16 + $0x30] sm:$0xe] }
  0x20   : > { %v306_v37 = vsel %vm2636_vm7, %v301_v11, %v305_v60  ;;  %v328_v7 = vor.u32 %v327_v26, %v324_v21  ;;  %v2094_v40 = vrot.slane %v2086_v36, 9  ;;  %v2657_v41 = vld [vmem:[%s2542_s16 + $0x3c] sm:$0x1]  ;;  %v320_v44 = vsel %vm2636_vm7, %v315_v30, %v319_v0  ;;  %v2663_v51 = vld [vmem:[%s2542_s16 + $0x44] sm:$0x1] }
  0x21   : > { %v342_v47 = vor.u32 %v341_v34, %v338_v27  ;;  %v1149_v48 = vrot.slane %v2643_v24, 5  ;;  %v2095_v50 = vrot.slane %v2087_v39, 9  ;;  %v2088_v52 = vld [vmem:[%s2542_s16 + $0x38] sm:$0xe]  ;;  %v2010_v53 = vcombine.low %v306_v37, %v320_v44  ;;  %v2089_v56 = vld [vmem:[%s2542_s16 + $0x40] sm:$0xe] }
  0x22   : > { %v329_v54 = vrot.slane %v328_v7, 4  ;;  %v1153_v55 = vrot.slane %v2649_v29, 5  ;;  %v2096_v59 = vrot.slane %v2088_v52, 9  ;;  %v1157_v63 = vrot.slane %v2657_v41, 5  ;;  %v2672_v3 = vld [vmem:[%s2542_s16 + $0x20] sm:$0xf] }
  0x23   : > { %v343_v60 = vrot.slane %v342_v47, 4  ;;  %v1150_v61 = vsel %vm2544_vm4, %v2094_v40, %v1149_v48  ;;  %v2097_v0 = vrot.slane %v2089_v56, 9  ;;  %2236 = vmatprep.mubr.msk.bf16.mxu1 %vm418_vm3, %v2010_v53  ;;  %v1161_v17 = vrot.slane %v2663_v51, 5  ;;  %v2681_v18 = vld [vmem:[%s2542_s16 + $0x28] sm:$0xf] }
  0x24   : > { %v334_v4 = vsel %vm2636_vm7, %v329_v54, %v333_v31  ;;  %v1154_v16 = vsel %vm2544_vm4, %v2095_v50, %v1153_v55  ;;  %v2684_v20 = vld [vmem:[%s2542_s16 + $0x24] sm:$0x1]  ;;  %v350_v21 = vshrl.u32 %v2672_v3, 16  ;;  %v1158_v11 = vsel %vm2544_vm4, %v2096_v59, %v1157_v63  ;;  %v2692_v26 = vld [vmem:[%s2542_s16 + $0x2c] sm:$0x1] }
  0x25   : > { %v348_v22 = vsel %vm2636_vm7, %v343_v60, %v347_v35  ;;  %v2100_v23 = vcombine.low %v1150_v61, %v1154_v16  ;;  %v353_v27 = vshll.u32 %v2672_v3, 16  ;;  %v2696_v30 = vld [vmem:[%s2542_s16 + $0x30] sm:$0xf]  ;;  %v1162_v34 = vsel %vm2544_vm4, %v2097_v0, %v1161_v17  ;;  %v2702_v7 = vld [vmem:[%s2542_s16 + $0x38] sm:$0xf] }
  0x26   : > { %v2011_v31 = vcombine.low %v334_v4, %v348_v22  ;;  %v352_v36 = vrot.slane %v350_v21, 4  ;;  %v359_v37 = vshll.u32 %v2684_v20, 16  ;;  %v2705_v35 = vld [vmem:[%s2542_s16 + $0x34] sm:$0x1]  ;;  %v2101_v39 = vcombine.low %v1158_v11, %v1162_v34  ;;  %v2711_v48 = vld [vmem:[%s2542_s16 + $0x3c] sm:$0x1] }
  0x27   : > { %2290 = vmatprep.mubr.msk.bf16.mxu0 %vm418_vm3, %v2100_v23  ;;  %v355_v40 = vrot.slane %v353_v27, 5  ;;  %v364_v44 = vshrl.u32 %v2681_v18, 16  ;;  %v367_v47 = vshll.u32 %v2681_v18, 16  ;;  %v373_v52 = vshll.u32 %v2692_v26, 16  ;;  %v2433_v16 = vld [vmem:[%s2542_s16 + $0x10] ss:$8 sps:$4 sm:$0xff]  }
  0x28   : > { %2237 = vmatmul.mubr.msk.bf16.vlgmr.msra.gmra.mrb[0].mxu1 %vm418_vm3, %v2011_v31  ;;  %v361_v50 = vrot.slane %v359_v37, 5  ;;  %v378_v53 = vshrl.u32 %v2696_v30, 16  ;;  %v381_v54 = vshll.u32 %v2696_v30, 16  ;;  %2291 = vmatmul.mubr.msk.bf16.gmra.mrb[4].mxu0 %vm418_vm3, %v2101_v39  ;;  %v387_v60 = vshll.u32 %v2705_v35, 16  ;;  %v2434_v31 = vld [vmem:[%s2542_s16 + $0x20] ss:$8 sps:$4 sm:$0xff]  }
  0x29   : > { %2245 = vmatpush3.bf16.msra.mxu1 %v2532_v8  ;;  %v356_v55 = vor.u32 %v355_v40, %v352_v36  ;;  %v366_v56 = vrot.slane %v364_v44, 4  ;;  %v369_v59 = vrot.slane %v367_v47, 5  ;;  %v375_v61 = vrot.slane %v373_v52, 5  ;;  %2296 = vmatprep.mubr.msk.bf16.mxu0 %vm418_vm3, %v2433_v16  ;;  %v2437_v44 = vld [vmem:[%s2542_s16 + $0x30] ss:$8 sps:$4 sm:$0xff]  }
  0x2a   : > { %v380_v63 = vrot.slane %v378_v53, 4  ;;  %v383_v0 = vrot.slane %v381_v54, 5  ;;  %v392_v4 = vshrl.u32 %v2702_v7, 16  ;;  %2416 = vmatprep.subr.msk.bf16.mxu1 %vm431_vm0, %v2521_v6  ;;  %v389_v21 = vrot.slane %v387_v60, 5  ;;  %v2122_v54 = vld [vmem:[%s2542_s16 + $0x10] sm:$0xf] }
  0x2b   : > { %v357_v17 = vrot.slane %v356_v55, 4  ;;  %v370_v8 = vor.u32 %v369_v59, %v366_v56  ;;  %v395_v22 = vshll.u32 %v2702_v7, 16  ;;  %v401_v27 = vshll.u32 %v2711_v48, 16  ;;  %v2124_v60 = vld [vmem:[%s2542_s16 + $0x18] sm:$0xf] }
  0x2c   : > { %v384_v23 = vor.u32 %v383_v0, %v380_v63  ;;  %v394_v11 = vrot.slane %v392_v4, 4  ;;  %v641_v37 = vrot.slane %v2628_v5, 5  ;;  %v2018_v40 = vcombine.low %v2589_v42, %v2596_v45  ;;  %v2746_v45 = vld [vmem:[%s2542_s16 + $0x14] sm:$0x1]  ;;  %v2170_v19 = vld [vmem:[%s3035_s2] ss:$0 sm:$0xff] }
  0x2d   : > { %v362_v34 = vsel %vm2636_vm7, %v357_v17, %v361_v50  ;;  %v371_v36 = vrot.slane %v370_v8, 4  ;;  %v397_v6 = vrot.slane %v395_v22, 5  ;;  %v403_v53 = vrot.slane %v401_v27, 5  ;;  %v2126_v17 = vld [vmem:[%s2542_s16 + $0x20] sm:$0xf] }
  0x2e   : > { %v385_v39 = vrot.slane %v384_v23, 4  ;;  %v2019_v50 = vcombine.low %v2614_v57, %v2619_v62  ;;  %v1399_v0 = vshrl.u32 %v2122_v54, 16  ;;  %v1402_v4 = vshll.u32 %v2122_v54, 16  ;;  %v2759_v23 = vld [vmem:[%s2542_s16 + $0x24] sm:$0x1] }
  0x2f   : > { %v376_v47 = vsel %vm2636_vm7, %v371_v36, %v375_v61  ;;  %v398_v52 = vor.u32 %v397_v6, %v394_v11  ;;  %v2750_v61 = vld [vmem:[%s2542_s16 + $0x1c] sm:$0x1]  ;;  %v1408_v16 = vshll.u32 %v2746_v45, 16  ;;  %v1413_v8 = vshrl.u32 %v2124_v60, 16 }
  0x30   : > { %v2012_v55 = vcombine.low %v362_v34, %v376_v47  ;;  %v390_v56 = vsel %vm2636_vm7, %v385_v39, %v389_v21  ;;  %2297 = vmatmul.mubr.msk.bf16.vlgmr.msra.gmra.mrb[0].mxu0 %vm418_vm3, %v2434_v31  ;;  %v1416_v21 = vshll.u32 %v2124_v60, 16  ;;  %v1422_v22 = vshll.u32 %v2750_v61, 16  ;;  %v2438_v31 = vld [vmem:[%s2542_s16 + $0x40] ss:$8 sps:$4 sm:$0xff]  }
  0x31   : > { %v399_v63 = vrot.slane %v398_v52, 4  ;;  %2300 = vmatprep.mubr.msk.bf16.mxu0 %vm418_vm3, %v2437_v44  ;;  %v1427_v11 = vshrl.u32 %v2126_v17, 16  ;;  %2305 = vmatpush3.bf16.msra.mxu0 %v2557_v13  ;;  %v1401_v34 = vrot.slane %v1399_v0, 4  ;;  %v1404_v36 = vrot.slane %v1402_v4, 5  ;;  %v2128_v39 = vld [vmem:[%s2542_s16 + $0x28] sm:$0xf] }
  0x32   : > { %2240 = vmatprep.mubr.msk.bf16.mxu1 %vm418_vm3, %v2012_v55  ;;  %v1410_v6 = vrot.slane %v1408_v16, 5  ;;  %v1415_v47 = vrot.slane %v1413_v8, 4  ;;  %v1418_v52 = vrot.slane %v1416_v21, 5  ;;  %v1424_v54 = vrot.slane %v1422_v22, 5  ;;  %v2767_v55 = vld [vmem:[%s2542_s16 + $0x2c] sm:$0x1]  ;;  %2422 = vmatprep.subr.msk.bf16.mxu0 %vm431_vm0, %v2566_v15 }
  0x33   : > { %v404_v27 = vsel %vm2636_vm7, %v399_v63, %v403_v53  ;;  %v1405_v60 = vor.u32 %v1404_v36, %v1401_v34  ;;  %v1429_v53 = vrot.slane %v1427_v11, 4  ;;  %v1430_v63 = vshll.u32 %v2126_v17, 16  ;;  %v600_v0 = vld [vmem:[%s2542_s16] sm:$0xe]  ;;  %v601_v21 = vld [vmem:[%s2542_s16 + $0x8] sm:$0xe] }
  0x34   : > { %v2013_v44 = vcombine.low %v390_v56, %v404_v27  ;;  %v1436_v13 = vshll.u32 %v2759_v23, 16  ;;  %v1419_v56 = vor.u32 %v1418_v52, %v1415_v47  ;;  %v1441_v4 = vshrl.u32 %v2128_v39, 16  ;;  %v602_v17 = vld [vmem:[%s2542_s16 + $0x10] sm:$0xe] }
  0x35   : > { %v1444_v16 = vshll.u32 %v2128_v39, 16  ;;  %v1450_v8 = vshll.u32 %v2767_v55, 16  ;;  %v1406_v22 = vrot.slane %v1405_v60, 4  ;;  %v1432_v15 = vrot.slane %v1430_v63, 5  ;;  %v2130_v60 = vld [vmem:[%s2542_s16 + $0x30] sm:$0xf] }
  0x36   : > { %2241 = vmatmul.mubr.msk.bf16.gmra.mrb[4].mxu1 %vm418_vm3, %v2013_v44  ;;  %v1438_v27 = vrot.slane %v1436_v13, 5  ;;  %v2026_v11 = vrot.slane %v600_v0, 9  ;;  %v1420_v34 = vrot.slane %v1419_v56, 4  ;;  %v1443_v36 = vrot.slane %v1441_v4, 4  ;;  %v603_v44 = vld [vmem:[%s2542_s16 + $0x18] sm:$0xe] }
  0x37   : > { %2246 = vmatprep.mubr.msk.bf16.mxu1 %vm418_vm3, %v2018_v40  ;;  %v1446_v42 = vrot.slane %v1444_v16, 5  ;;  %v1452_v59 = vrot.slane %v1450_v8, 5  ;;  %v1411_v39 = vsel %vm2636_vm7, %v1406_v22, %v1410_v6  ;;  %v1433_v40 = vor.u32 %v1432_v15, %v1429_v53  ;;  %v2132_v6 = vld [vmem:[%s2542_s16 + $0x38] sm:$0xf]  ;;  %v2134_v8 = vld [vmem:[%s2542_s16 + $0x40] sm:$0xf] }
  0x38   : > { %2301 = vmatmul.mubr.msk.bf16.gmra.mrb[4].mxu0 %vm418_vm3, %v2438_v31  ;;  %v2786_v47 = vsel %vm2544_vm4, %v2026_v11, %v629_v1  ;;  %v2027_v52 = vrot.slane %v601_v21, 9  ;;  %v1425_v63 = vsel %vm2636_vm7, %v1420_v34, %v1424_v54  ;;  %v2028_v0 = vrot.slane %v602_v17, 9  ;;  %v2798_v1 = vld [vmem:[%s2542_s16 + $0x34] sm:$0x1]  ;;  %v2825_v15 = vld [vmem:[%s2542_s16 + $0x44] sm:$0x1] }
  0x39   : > { %v1447_v13 = vor.u32 %v1446_v42, %v1443_v36  ;;  %v2029_v31 = vrot.slane %v603_v44, 9  ;;  %v2138_v56 = vcombine.low %v1411_v39, %v1425_v63  ;;  %v1434_v4 = vrot.slane %v1433_v40, 4  ;;  %v2136_v17 = vld [vmem:[%s2542_s16 + $0x48] sm:$0xf]  ;;  %v2838_v34 = vld [vmem:[%s3037_s4] sm:$0x3] }
  0x3a   : > { %v2795_v46 = vsel %vm2544_vm4, %v2027_v52, %v633_v25  ;;  %v1455_v53 = vshrl.u32 %v2130_v60, 16  ;;  %v2807_v42 = vsel %vm2544_vm4, %v2028_v0, %v637_v38  ;;  %v2816_v25 = vld [vmem:[%s2542_s16 + $0x3c] sm:$0x1]  ;;  %v1458_v22 = vshll.u32 %v2130_v60, 16  ;;  %v2847_v36 = vld [vmem:[%s2542_s16 + $0x4c] sm:$0x1] }
  0x3b   : > { %v1448_v16 = vrot.slane %v1447_v13, 4  ;;  %v2034_v54 = vcombine.low %v2786_v47, %v2795_v46  ;;  %v2813_v49 = vsel %vm2544_vm4, %v2029_v31, %v641_v37  ;;  %2306 = vmatprep.mubr.msk.bf16.mxu0 %vm418_vm3, %v2138_v56  ;;  %v1439_v21 = vsel %vm2636_vm7, %v1434_v4, %v1438_v27  ;;  %v604_v60 = vld [vmem:[%s2542_s16 + $0x20] sm:$0xe]  ;;  %v605_v0 = vld [vmem:[%s2542_s16 + $0x28] sm:$0xe] }
  0x3c   : > { %v2035_v2 = vcombine.low %v2807_v42, %v2813_v49  ;;  %v1457_v38 = vrot.slane %v1455_v53, 4  ;;  %v1464_v37 = vshll.u32 %v2798_v1, 16  ;;  %v1469_v11 = vshrl.u32 %v2132_v6, 16  ;;  %v2148_v46 = vld [vmem:[%s2542_s16 + $0x20] sm:$0xe] }
  0x3d   : > { %v1453_v5 = vsel %vm2636_vm7, %v1448_v16, %v1452_v59  ;;  %v1472_v27 = vshll.u32 %v2132_v6, 16  ;;  %v3044_v57 = vcombine.low %v2672_v3, %v2681_v18  ;;  %v1478_v59 = vshll.u32 %v2816_v25, 16 }
  0x3e   : > { %2247 = vmatmul.mubr.msk.bf16.vlgmr.msra.gmra.mrb[0].mxu1 %vm418_vm3, %v2019_v50  ;;  %v2139_v62 = vcombine.low %v1439_v21, %v1453_v5  ;;  %v1460_v50 = vrot.slane %v1458_v22, 5  ;;  %v1483_v44 = vshrl.u32 %v2134_v8, 16  ;;  %v1466_v39 = vrot.slane %v1464_v37, 5  ;;  %v607_v22 = vld [vmem:[%s2542_s16 + $0x38] sm:$0xe] }
  0x3f   : > { %2255 = vmatpush3.bf16.msra.mxu1 %v2553_v12  ;;  %2250 = vmatprep.mubr.msk.bf16.mxu1 %vm418_vm3, %v3044_v57  ;;  %v1471_v40 = vrot.slane %v1469_v11, 4  ;;  %v1474_v12 = vrot.slane %v1472_v27, 5  ;;  %v1486_v52 = vshll.u32 %v2134_v8, 16  ;;  %v1480_v18 = vrot.slane %v1478_v59, 5 }
  0x40   : > { %2417 = vmatprep.subr.msk.bf16.mxu1 %vm431_vm0, %v2537_v9  ;;  %2307 = vmatmul.mubr.msk.bf16.vlgmr.msra.gmra.mrb[0].mxu0 %vm418_vm3, %v2139_v62  ;;  %v1461_v3 = vor.u32 %v1460_v50, %v1457_v38  ;;  %v1485_v63 = vrot.slane %v1483_v44, 4  ;;  %v1492_v13 = vshll.u32 %v2825_v15, 16  ;;  %v1497_v4 = vshrl.u32 %v2136_v17, 16  ;;  %v606_v9 = vld [vmem:[%s2542_s16 + $0x30] sm:$0xe] }
  0x41   : > { %v1475_v31 = vor.u32 %v1474_v12, %v1471_v40  ;;  %v1488_v56 = vrot.slane %v1486_v52, 5  ;;  %v1500_v6 = vshll.u32 %v2136_v17, 16  ;;  %2315 = vmatpush3.bf16.msra.mxu0 %v2581_v32  ;;  %v1506_v8 = vshll.u32 %v2847_v36, 16  ;;  %v2146_v40 = vld [vmem:[%s2542_s16 + $0x10] sm:$0xe] }
  0x42   : > { %v1462_v53 = vrot.slane %v1461_v3, 4  ;;  %v1494_v16 = vrot.slane %v1492_v13, 5  ;;  %v2030_v21 = vrot.slane %v604_v60, 9  ;;  %2423 = vmatprep.subr.msk.bf16.mxu0 %vm1825_vm8, %v2838_v34  ;;  %v1499_v37 = vrot.slane %v1497_v4, 4  ;;  %v2147_v52 = vld [vmem:[%s2542_s16 + $0x18] sm:$0xe] }
  0x43   : > { %v1476_v38 = vrot.slane %v1475_v31, 4  ;;  %v1489_v5 = vor.u32 %v1488_v56, %v1485_v63  ;;  %v1502_v11 = vrot.slane %v1500_v6, 5  ;;  %v1508_v32 = vrot.slane %v1506_v8, 5  ;;  %v2150_v31 = vld [vmem:[%s2542_s16 + $0x30] sm:$0xe] }
  0x44   : > { %v1467_v27 = vsel %vm2636_vm7, %v1462_v53, %v1466_v39  ;;  %v645_v17 = vrot.slane %v2684_v20, 5  ;;  %v2031_v57 = vrot.slane %v605_v0, 9  ;;  %v3045_v62 = vcombine.low %v2696_v30, %v2702_v7  ;;  %v2151_v56 = vld [vmem:[%s2542_s16 + $0x38] sm:$0xe] }
  0x45   : > { %v1481_v50 = vsel %vm2636_vm7, %v1476_v38, %v1480_v18  ;;  %v1490_v59 = vrot.slane %v1489_v5, 4  ;;  %v1503_v44 = vor.u32 %v1502_v11, %v1499_v37  ;;  %v649_v39 = vrot.slane %v2692_v26, 5  ;;  %v1006_v18 = vld [vmem:[%s3034_s1 + $0x10] sm:$0xf]  ;;  %v2153_v38 = vld [vmem:[%s2542_s16 + $0x48] sm:$0xe] }
  0x46   : > { %2251 = vmatmul.mubr.msk.bf16.gmra.mrb[4].mxu1 %vm418_vm3, %v3045_v62  ;;  %v2140_v20 = vcombine.low %v1467_v27, %v1481_v50  ;;  %v646_v30 = vsel %vm2544_vm4, %v2030_v21, %v645_v17  ;;  %v2032_v7 = vrot.slane %v606_v9, 9  ;;  %v653_v12 = vrot.slane %v2705_v35, 5 }
  0x47   : > { %2256 = vmatprep.mubr.msk.bf16.mxu1 %vm418_vm3, %v2034_v54  ;;  %v1495_v60 = vsel %vm2636_vm7, %v1490_v59, %v1494_v16  ;;  %v1504_v26 = vrot.slane %v1503_v44, 4  ;;  %v650_v3 = vsel %vm2544_vm4, %v2031_v57, %v649_v39  ;;  %v2033_v47 = vrot.slane %v607_v22, 9  ;;  %v2149_v54 = vld [vmem:[%s2542_s16 + $0x28] sm:$0xe]  ;;  %v2152_v16 = vld [vmem:[%s2542_s16 + $0x40] sm:$0xe] }
  0x48   : > { %2310 = vmatprep.mubr.msk.bf16.mxu0 %vm418_vm3, %v2140_v20  ;;  %v2036_v35 = vcombine.low %v646_v30, %v650_v3  ;;  %v2893_v63 = vsel %vm2544_vm4, %v2032_v7, %v653_v12  ;;  %v657_v13 = vrot.slane %v2711_v48, 5  ;;  %v2154_v0 = vrot.slane %v2146_v40, 9  ;;  %v2058_v44 = vld [vmem:[%s2542_s16 + $0x8] sm:$0xf]  ;;  %v2060_v30 = vld [vmem:[%s2542_s16 + $0x10] sm:$0xf] }
  0x49   : > { %v1509_v4 = vsel %vm2636_vm7, %v1504_v26, %v1508_v32  ;;  %v1637_v6 = vrot.slane %v2746_v45, 5  ;;  %v2155_v9 = vrot.slane %v2147_v52, 9  ;;  %v1641_v53 = vrot.slane %v2750_v61, 5  ;;  %v2441_v39 = vld [vmem:[%s2542_s16 + $0x8] ss:$8 sps:$4 sm:$0xff]  }
  0x4a   : > { %v2141_v8 = vcombine.low %v1495_v60, %v1509_v4  ;;  %v658_v21 = vsel %vm2544_vm4, %v2033_v47, %v657_v13  ;;  %v2156_v22 = vrot.slane %v2148_v46, 9  ;;  %v1645_v48 = vrot.slane %v2759_v23, 5  ;;  %v2062_v12 = vld [vmem:[%s2542_s16 + $0x18] sm:$0xf] }
  0x4b   : > { %v2037_v5 = vcombine.low %v2893_v63, %v658_v21  ;;  %v1638_v37 = vsel %vm2544_vm4, %v2154_v0, %v1637_v6  ;;  %v1642_v45 = vsel %vm2544_vm4, %v2155_v9, %v1641_v53  ;;  %v2157_v11 = vrot.slane %v2149_v54, 9  ;;  %v2066_v53 = vld [vmem:[%s2542_s16 + $0x28] sm:$0xf] }
  0x4c   : > { %2311 = vmatmul.mubr.msk.bf16.gmra.mrb[4].mxu0 %vm418_vm3, %v2141_v8  ;;  %v2162_v61 = vcombine.low %v1638_v37, %v1642_v45  ;;  %v1646_v23 = vsel %vm2544_vm4, %v2156_v22, %v1645_v48  ;;  %v1649_v27 = vrot.slane %v2767_v55, 5  ;;  %v2924_v32 = vsel %vm431_vm0, %v1006_v18, 0  ;;  %v2068_v22 = vld [vmem:[%s2542_s16 + $0x30] sm:$0xf] }
  0x4d   : > { %v2158_v17 = vrot.slane %v2150_v31, 9  ;;  %v1653_v57 = vrot.slane %v2798_v1, 5  ;;  %v2159_v62 = vrot.slane %v2151_v56, 9  ;;  %v1657_v50 = vrot.slane %v2816_v25, 5 }
  0x4e   : > { %2257 = vmatmul.mubr.msk.bf16.vlgmr.msra.gmra.mrb[0].mxu1 %vm418_vm3, %v2035_v2  ;;  %v1650_v55 = vsel %vm2544_vm4, %v2157_v11, %v1649_v27  ;;  %v2160_v59 = vrot.slane %v2152_v16, 9  ;;  %v1661_v42 = vrot.slane %v2825_v15, 5  ;;  %v2161_v49 = vrot.slane %v2153_v38, 9  ;;  %2316 = vmatprep.mubr.msk.bf16.mxu0 %vm418_vm3, %v2162_v61  ;;  %v2445_v11 = vld [vmem:[%s2917_s28] sm:$0xff]  }
  0x4f   : > { %2265 = vmatpush3.bf16.msra.mxu1 %v2561_v14  ;;  %2260 = vmatprep.mubr.msk.bf16.mxu1 %vm418_vm3, %v2036_v35  ;;  %v2163_v1 = vcombine.low %v1646_v23, %v1650_v55  ;;  %v1654_v14 = vsel %vm2544_vm4, %v2158_v17, %v1653_v57  ;;  %v1658_v25 = vsel %vm2544_vm4, %v2159_v62, %v1657_v50  ;;  %v1665_v2 = vrot.slane %v2847_v36, 5  ;;  %v2064_v36 = vld [vmem:[%s2542_s16 + $0x20] sm:$0xf]  ;;  %v2070_v17 = vld [vmem:[%s2542_s16 + $0x38] sm:$0xf] }
  0x50   : > { %2418 = vmatprep.subr.msk.bf16.mxu1 %vm431_vm0, %v1006_v18  ;;  %v2164_v40 = vcombine.low %v1654_v14, %v1658_v25  ;;  %v2948_v15 = vsel %vm2544_vm4, %v2160_v59, %v1661_v42  ;;  %v1827_v20 = vsel %vm1825_vm8, %v2838_v34, 0  ;;  %v895_v7 = vshrl.u32 %v2058_v44, 16  ;;  %v2442_v57 = vld [vmem:[%s2542_s16 + $0x18] ss:$8 sps:$4 sm:$0xff]  }
  0x51   : > { %v1666_v52 = vsel %vm2544_vm4, %v2161_v49, %v1665_v2  ;;  %v898_v60 = vshll.u32 %v2058_v44, 16  ;;  %v909_v26 = vshrl.u32 %v2060_v30, 16  ;;  %v912_v3 = vshll.u32 %v2060_v30, 16  ;;  %v2072_v42 = vld [vmem:[%s2542_s16 + $0x40] sm:$0xf] }
  0x52   : > { %v2165_v47 = vcombine.low %v2948_v15, %v1666_v52  ;;  %v897_v46 = vrot.slane %v895_v7, 4  ;;  %v923_v54 = vshrl.u32 %v2062_v12, 16  ;;  %v926_v18 = vshll.u32 %v2062_v12, 16  ;;  %v2443_v49 = vld [vmem:[%s2542_s16 + $0x28] ss:$8 sps:$4 sm:$0xff]  }
  0x53   : > { %v900_v35 = vrot.slane %v898_v60, 5  ;;  %v911_v63 = vrot.slane %v909_v26, 4  ;;  %v914_v34 = vrot.slane %v912_v3, 5  ;;  %v937_v13 = vshrl.u32 %v2064_v36, 16 }
  0x54   : > { %2317 = vmatmul.mubr.msk.bf16.vlgmr.msra.gmra.mrb[0].mxu0 %vm418_vm3, %v2163_v1  ;;  %v925_v10 = vrot.slane %v923_v54, 4  ;;  %v928_v0 = vrot.slane %v926_v18, 5  ;;  %v940_v31 = vshll.u32 %v2064_v36, 16  ;;  %v960_v56 = vshll.u32 %v2643_v24, 16  ;;  %v2444_v18 = vld [vmem:[%s2542_s16 + $0x38] ss:$8 sps:$4 sm:$0xff]  }
  0x55   : > { %2320 = vmatprep.mubr.msk.bf16.mxu0 %vm418_vm3, %v2164_v40  ;;  %v901_v4 = vor.u32 %v900_v35, %v897_v46  ;;  %v915_v6 = vor.u32 %v914_v34, %v911_v63  ;;  %v939_v9 = vrot.slane %v937_v13, 4  ;;  %v974_v16 = vshll.u32 %v2649_v29, 16  ;;  %2325 = vmatpush3.bf16.msra.mxu0 %v1827_v20  ;;  %v2447_v35 = vld [vmem:[%s2917_s28 + $0x10] sm:$0xff]  }
  0x56   : > { %2261 = vmatmul.mubr.msk.bf16.gmra.mrb[4].mxu1 %vm418_vm3, %v2037_v5  ;;  %v929_v8 = vor.u32 %v928_v0, %v925_v10  ;;  %v942_v21 = vrot.slane %v940_v31, 5  ;;  %v951_v24 = vshrl.u32 %v2066_v53, 16  ;;  %v954_v48 = vshll.u32 %v2066_v53, 16 }
  0x57   : > { %2266 = vmatprep.mubr.msk.bf16.mxu1 %vm418_vm3, %v2441_v39  ;;  %v902_v38 = vrot.slane %v901_v4, 4  ;;  %v916_v5 = vrot.slane %v915_v6, 4  ;;  %v962_v37 = vrot.slane %v960_v56, 5  ;;  %v965_v45 = vshrl.u32 %v2068_v22, 16  ;;  %v2448_v4 = vld [vmem:[%s2917_s28 + $0x18] sm:$0xff]  }
  0x58   : > { %v930_v61 = vrot.slane %v929_v8, 4  ;;  %v943_v23 = vor.u32 %v942_v21, %v939_v9  ;;  %v953_v29 = vrot.slane %v951_v24, 4  ;;  %v956_v27 = vrot.slane %v954_v48, 5 }
  0x59   : > { %v907_v62 = vsel %vm2636_vm7, %v902_v38, %v2574_v28  ;;  %v921_v50 = vsel %vm2636_vm7, %v916_v5, %v2583_v33  ;;  %v967_v55 = vrot.slane %v965_v45, 4  ;;  %v968_v59 = vshll.u32 %v2068_v22, 16  ;;  %v2179_v5 = vld [vmem:[%s3038_s5] ss:$0 sm:$0xff] }
  0x5a   : > { %v2074_v1 = vcombine.low %v907_v62, %v921_v50  ;;  %v935_v14 = vsel %vm2636_vm7, %v930_v61, %v2591_v43  ;;  %v944_v25 = vrot.slane %v943_v23, 4  ;;  %v957_v2 = vor.u32 %v956_v27, %v953_v29 }
  0x5b   : > { %v970_v44 = vrot.slane %v968_v59, 5  ;;  %v976_v39 = vrot.slane %v974_v16, 5  ;;  %v979_v40 = vshrl.u32 %v2070_v17, 16  ;;  %v982_v15 = vshll.u32 %v2070_v17, 16 }
  0x5c   : > { %2321 = vmatmul.mubr.msk.bf16.gmra.mrb[4].mxu0 %vm418_vm3, %v2165_v47  ;;  %v949_v28 = vsel %vm2636_vm7, %v944_v25, %v2616_v58  ;;  %v958_v33 = vrot.slane %v957_v2, 4  ;;  %v988_v20 = vshll.u32 %v2657_v41, 16  ;;  %v993_v30 = vshrl.u32 %v2072_v42, 16  ;;  %v2446_v47 = vld [vmem:[%s2917_s28 + $0x8] sm:$0xff]  }
  0x5d   : > { %2326 = vmatprep.mubr.msk.bf16.mxu0 %vm1812_vm9, %v2445_v11  ;;  %v2075_v43 = vcombine.low %v935_v14, %v949_v28  ;;  %v971_v7 = vor.u32 %v970_v44, %v967_v55  ;;  %v981_v12 = vrot.slane %v979_v40, 4  ;;  %v984_v52 = vrot.slane %v982_v15, 5 }
  0x5e   : > { %2267 = vmatmul.mubr.msk.bf16.vlgmr.msra.gmra.mrb[0].mxu1 %vm418_vm3, %v2442_v57  ;;  %v995_v58 = vrot.slane %v993_v30, 4  ;;  %v996_v60 = vshll.u32 %v2072_v42, 16  ;;  %v963_v41 = vsel %vm2636_vm7, %v958_v33, %v962_v37  ;;  %v1002_v36 = vshll.u32 %v2663_v51, 16 }
  0x5f   : > { %2275 = vmatpush3.bf16.msra.mxu1 %v2924_v32  ;;  %2270 = vmatprep.mubr.msk.bf16.mxu1 %vm418_vm3, %v2443_v49  ;;  %v972_v26 = vrot.slane %v971_v7, 4  ;;  %v985_v3 = vor.u32 %v984_v52, %v981_v12  ;;  %v990_v46 = vrot.slane %v988_v20, 5 }
  0x60   : > { %v998_v54 = vrot.slane %v996_v60, 5  ;;  %v1004_v10 = vrot.slane %v1002_v36, 5 }
  0x61   : > { %v977_v32 = vsel %vm2636_vm7, %v972_v26, %v976_v39  ;;  %v986_v63 = vrot.slane %v985_v3, 4 }
  0x62   : > { %v2076_v34 = vcombine.low %v963_v41, %v977_v32  ;;  %v999_v13 = vor.u32 %v998_v54, %v995_v58 }
  0x63   : > { %v991_v0 = vsel %vm2636_vm7, %v986_v63, %v990_v46 }
  0x64   : > { %2327 = vmatmul.mubr.msk.bf16.vlgmr.msra.gmra.mrb[0].mxu0 %vm1812_vm9, %v2446_v47  ;;  %v1000_v31 = vrot.slane %v999_v13, 4 }
  0x65   : > { %2330 = vmatprep.mubr.msk.bf16.mxu0 %vm1812_vm9, %v2447_v35 }
  0x66   : > { %2271 = vmatmul.mubr.msk.bf16.gmra.mrb[4].mxu1 %vm418_vm3, %v2444_v18  ;;  %v1005_v51 = vsel %vm2636_vm7, %v1000_v31, %v1004_v10 }
  0x67   : > { %2276 = vmatprep.mubr.msk.bf16.mxu1 %vm418_vm3, %v2074_v1  ;;  %v2077_v56 = vcombine.low %v991_v0, %v1005_v51 }
  0x6c   : > { %2331 = vmatmul.mubr.msk.bf16.gmra.mrb[4].mxu0 %vm1812_vm9, %v2448_v4 }
  0x6e   : > { %2277 = vmatmul.mubr.msk.bf16.vlgmr.msra.gmra.mrb[0].mxu1 %vm418_vm3, %v2075_v43 }
  0x6f   : > { %2280 = vmatprep.mubr.msk.bf16.mxu1 %vm418_vm3, %v2076_v34 }
  0x76   : > { %2281 = vmatmul.mubr.msk.bf16.gmra.mrb[4].mxu1 %vm418_vm3, %v2077_v56 }
 0x137   : > { %v2328_v6 = vpop.f32.mrb[0].mxu0 }
 0x138   : > { %v1863_v9 = vpop.f32.mrb[1].mxu0 }
 0x139   : > { %v2329_v53 = vpop.f32.mrb[2].mxu0 }
 0x13a   : > { %v1866_v16 = vpop.f32.mrb[3].mxu0 }
 0x13f   : > { %v2332_v8 = vpop.f32.mrb[4].mxu0 }
 0x140   : > { %v1879_v22 = vpop.f32.mrb[5].mxu0 }
 0x141   : > { %v2278_v21 = vpop.f32.mrb[0].mxu1  ;;  %v2333_v38 = vpop.f32.mrb[6].mxu0 }
 0x142   : > { %v2334_v24 = vadd.f32 %v2278_v21, %v2170_v19  ;;  %v1068_v48 = vpop.f32.mrb[1].mxu1  ;;  %v1882_v11 = vpop.f32.mrb[7].mxu0 }
 0x143   : > { %v2336_v37 = vadd.f32 %v2170_v19, %v1068_v48  ;;  %v2279_v45 = vpop.f32.mrb[2].mxu1 }
 0x144   : > { %v2335_v61 = vadd.f32 %v2334_v24, %v2328_v6  ;;  %v2338_v23 = vadd.f32 %v2279_v45, %v2170_v19  ;;  %v1071_v29 = vpop.f32.mrb[3].mxu1 }
 0x145   : > { %v2337_v27 = vadd.f32 %v2336_v37, %v1863_v9  ;;  %v2340_v17 = vadd.f32 %v2170_v19, %v1071_v29 }
 0x146   : > { %v1911_v57 = vadd.f32 %v2335_v61, %v2179_v5  ;;  %v2339_v62 = vadd.f32 %v2338_v23, %v2329_v53 }
 0x147   : > { %v1909_v50 = vadd.f32 %v2337_v27, %v2179_v5  ;;  %v2341_v55 = vadd.f32 %v2340_v17, %v1866_v16 }
 0x148   : > { %v1919_v59 = vmax.f32 %v1911_v57, 0.0  ;;  %v1912_v42 = vadd.f32 %v2339_v62, %v2179_v5 }
 0x149   : > { %v1917_v49 = vmax.f32 %v1909_v50, 0.0  ;;  %v1910_v1 = vadd.f32 %v2341_v55, %v2179_v5  ;;  %v2282_v14 = vpop.f32.mrb[4].mxu1 }
 0x14a   : > { %1927 = vst [vmem:[%s3020_s12 + $0x10] sm:$0xff] %v1919_v59  ;;  %v1920_v25 = vmax.f32 %v1912_v42, 0.0  ;;  %v2342_v2 = vadd.f32 %v2282_v14, %v2170_v19  ;;  %v1084_v44 = vpop.f32.mrb[5].mxu1 }
 0x14b   : > { %1925 = vst [vmem:[%s3020_s12] sm:$0xff] %v1917_v49  ;;  %v1918_v39 = vmax.f32 %v1910_v1, 0.0  ;;  %v2344_v40 = vadd.f32 %v2170_v19, %v1084_v44  ;;  %v2283_v15 = vpop.f32.mrb[6].mxu1 }
 0x14c   : > { %1928 = vst [vmem:[%s3020_s12 + $0x18] sm:$0xff] %v1920_v25  ;;  %v2343_v28 = vadd.f32 %v2342_v2, %v2332_v8  ;;  %v2346_v33 = vadd.f32 %v2283_v15, %v2170_v19  ;;  %v1087_v20 = vpop.f32.mrb[7].mxu1 }
 0x14d   : > { %1926 = vst [vmem:[%s3020_s12 + $0x8] sm:$0xff] %v1918_v39  ;;  %v2345_v30 = vadd.f32 %v2344_v40, %v1879_v22  ;;  %v2348_v43 = vadd.f32 %v2170_v19, %v1087_v20 }
 0x14e   : > { %v1915_v7 = vadd.f32 %v2343_v28, %v2179_v5  ;;  %v2347_v12 = vadd.f32 %v2346_v33, %v2333_v38 }
 0x14f   : > { %v1913_v52 = vadd.f32 %v2345_v30, %v2179_v5  ;;  %v2349_v58 = vadd.f32 %v2348_v43, %v1882_v11 }
 0x150   : > { %v1923_v60 = vmax.f32 %v1915_v7, 0.0  ;;  %v1916_v41 = vadd.f32 %v2347_v12, %v2179_v5 }
 0x151   : > { %v1921_v26 = vmax.f32 %v1913_v52, 0.0  ;;  %v1914_v3 = vadd.f32 %v2349_v58, %v2179_v5 }
 0x152   : > { %1931 = vst [vmem:[%s3020_s12 + $0x30] sm:$0xff] %v1923_v60  ;;  %v1924_v36 = vmax.f32 %v1916_v41, 0.0 }
 0x153   : > { %1929 = vst [vmem:[%s3020_s12 + $0x20] sm:$0xff] %v1921_v26  ;;  %v1922_v47 = vmax.f32 %v1914_v3, 0.0 }
 0x154   : > { %1932 = vst [vmem:[%s3020_s12 + $0x38] sm:$0xff] %v1924_v36 }
 0x155   : > { %1930 = vst [vmem:[%s3020_s12 + $0x28] sm:$0xff] %v1922_v47 }
 0x156 PF: > { %s16_s21 = sadd.s32 1, %s2455_s21  }
 0x157   : > { %p13_p4 = scmp.ge.s32.totalorder %s16_s21, 4  }
 0x159   :  { %15 = sbr.rel (!%p13_p4) target bundleno = 1 (0x1), region = 79 }

</bundles_post_ra>
